<compile_context>
chip_gen: v5e
topology: v5e:2x2
jax: 0.10.0
libtpu: 0.0.40
codegen_flags: <defaults>
</compile_context>

<pallas_src>
import functools
import numpy as np
import jax
import jax.numpy as jnp
from jax.experimental import pallas as pl
from jax.experimental.pallas import tpu as pltpu


# ---- PyTorch-equivalent 'SAME' padding computation (incl. ConstantPad3d reorder) ----
def get_padding_shape(filter_shape, stride):
    def _pad_top_bottom(filter_dim, stride_val):
        pad_along = max(filter_dim - stride_val, 0)
        pad_top = pad_along // 2
        pad_bottom = pad_along - pad_top
        return (pad_top, pad_bottom)

    padding_shape = []
    for filter_dim, stride_val in zip(filter_shape, stride):
        pad_top, pad_bottom = _pad_top_bottom(filter_dim, stride_val)
        padding_shape.append(pad_top)
        padding_shape.append(pad_bottom)
    depth_top = padding_shape.pop(0)
    depth_bottom = padding_shape.pop(0)
    padding_shape.append(depth_top)
    padding_shape.append(depth_bottom)
    # order (h_t, h_b, w_t, w_b, d_t, d_b) fed to ConstantPad3d as
    # (W_left, W_right, H_top, H_bottom, D_front, D_back) -- reproduced exactly.
    return tuple(padding_shape)


def _ceil_pool_out(L, k, s):
    o = -(-(L - k) // s) + 1          # ceil_mode output size (pool padding = 0)
    if (o - 1) * s >= L:              # PyTorch ceil_mode correction
        o -= 1
    return o


# ------------------------------- Pallas kernel --------------------------------
def _maxpool3d_kernel(*refs, KD, KH, KW, SH, SW, OH, OW, ROW_CHUNK):
    # refs[:KD]  : KD input refs, each (1, SH, SW, Hq, Wq, TC) -- one depth tap.
    # refs[KD]   : output ref (1, OH, OW, TC), written exactly once per grid step.
    x_refs = refs[:KD]
    o_ref = refs[KD]

    # Static chunking over output rows keeps the accumulator in vregs.
    for oh0 in range(0, OH, ROW_CHUNK):
        rows = min(ROW_CHUNK, OH - oh0)
        acc = None
        for kd in range(KD):
            xr = x_refs[kd]
            for kh in range(KH):
                qh, rh = divmod(kh, SH)
                for kw in range(KW):
                    qw, rw = divmod(kw, SW)
                    # Unit-stride window slice: (rows, OW, TC).
                    win = xr[0, rh, rw,
                             qh + oh0: qh + oh0 + rows,
                             qw: qw + OW, :]
                    acc = win if acc is None else jnp.maximum(acc, win)
        o_ref[0, oh0: oh0 + rows, :, :] = acc


# --------------------------------- Wrapper -------------------------------------
def _maxpool3d_same_impl(x, kernel_size, stride, max_lane_tile=None):
    """Equivalent of I3D Maxpool3d(kernel_size, stride, padding='SAME').forward.

    x: (N, C, D, H, W), PyTorch NCDHW convention."""
    N, C, D, H, W = x.shape
    KD, KH, KW = kernel_size
    SD, SH, SW = stride
    NC = N * C
    dtype = x.dtype
    itemsize = jnp.dtype(dtype).itemsize

    if jnp.issubdtype(dtype, jnp.floating):
        mask_val = float("-inf")
    else:
        # TODO(synk): integer inputs untested for the full ceil_mode edge path.
        mask_val = int(jnp.iinfo(dtype).min)

    # 1) ConstantPad3d("SAME") amounts (exact module reproduction).
    p = get_padding_shape(kernel_size, stride)
    pw, ph, pd = (p[0], p[1]), (p[2], p[3]), (p[4], p[5])
    Dp, Hp, Wp = D + pd[0] + pd[1], H + ph[0] + ph[1], W + pw[0] + pw[1]

    # 2) Output extents (ceil_mode=True, pooling padding=0).
    OD = _ceil_pool_out(Dp, KD, SD)
    OH = _ceil_pool_out(Hp, KH, SH)
    OW = _ceil_pool_out(Wp, KW, SW)

    # 3) Kernel-side layout extents: H/W split exactly into (Hq,SH)/(Wq,SW);
    #    D covers the deepest plane any window touches.
    Hq = OH + (KH - 1) // SH
    Wq = OW + (KW - 1) // SW
    H_lay, W_lay = Hq * SH, Wq * SW
    D_lay = (OD - 1) * SD + KD

    # 4) Single fused relayout pass (whole wrapper is jitted):
    #    SAME zero-pad -> ceil_mode overhang filled with -inf (so it never
    #    participates in the max) -> (D, SH, SW, Hq, Wq, NC) -> NC padded to 128.
    x_p = jnp.pad(x, ((0, 0), (0, 0),
                      (pd[0], pd[1] + max(D_lay - Dp, 0)),
                      (ph[0], ph[1] + max(H_lay - Hp, 0)),
                      (pw[0], pw[1] + max(W_lay - Wp, 0))))
    x_p = x_p[:, :, :D_lay, :H_lay, :W_lay]
    if D_lay > Dp:
        x_p = x_p.at[:, :, Dp:, :, :].set(mask_val)
    if H_lay > Hp:
        x_p = x_p.at[:, :, :, Hp:, :].set(mask_val)
    if W_lay > Wp:
        x_p = x_p.at[:, :, :, :, Wp:].set(mask_val)

    xk = x_p.reshape(N, C, D_lay, Hq, SH, Wq, SW)
    xk = xk.transpose(2, 4, 6, 3, 5, 0, 1).reshape(D_lay, SH, SW, Hq, Wq, NC)
    NC_pad = -(-NC // 128) * 128          # lane-dense last dim (padded channels
    if NC_pad != NC:                      # are zeros and get sliced off below)
        xk = jnp.pad(xk, ((0, 0),) * 5 + ((0, NC_pad - NC),))

    # 5) VMEM-aware lane tiling (v7x: 64 MiB, v5e/v6e: 128 MiB).
    try:
        vmem_cap = int(pltpu.get_tpu_info().vmem_capacity_bytes)
    except Exception:
        vmem_cap = 64 * 1024 * 1024       # conservative fallback
    budget = int(vmem_cap * 0.85) - (6 << 20)   # headroom for compiler scratch

    def _need(tc):
        plane = H_lay * W_lay * tc * itemsize        # one depth tap block
        out_b = OH * OW * tc * itemsize
        return 2 * KD * plane + 2 * out_b            # double-buffered in + out

    tc_cap = max_lane_tile if max_lane_tile is not None else NC_pad
    TC = 128
    cand = 128
    while cand <= min(NC_pad, tc_cap):
        if NC_pad % cand == 0 and _need(cand) <= budget:
            TC = cand
        cand += 128
    # TODO(synk): if even TC=128 exceeds the budget (enormous H*W planes), an
    # additional H-tiling grid axis would be needed; not required for I3D shapes.
    n_lane_blocks = NC_pad // TC

    need = _need(TC)
    vmem_limit = max(need + (4 << 20), 32 << 20)
    vmem_limit = min(vmem_limit, int(vmem_cap * 0.85))
    vmem_limit = max(vmem_limit, need + (1 << 20))
    vmem_limit = min(vmem_limit, vmem_cap)

    # Accumulator chunk ~<= 16 f32 vregs so it never spills.
    ROW_CHUNK = max(1, min(OH, 16384 // (OW * TC)))

    kernel = functools.partial(_maxpool3d_kernel, KD=KD, KH=KH, KW=KW,
                               SH=SH, SW=SW, OH=OH, OW=OW, ROW_CHUNK=ROW_CHUNK)

    def _in_map(c, od, *, kd):
        return (od * SD + kd, 0, 0, 0, 0, c)

    in_specs = [pl.BlockSpec((1, SH, SW, Hq, Wq, TC),
                             functools.partial(_in_map, kd=kd))
                for kd in range(KD)]

    out = pl.pallas_call(
        kernel,
        out_shape=jax.ShapeDtypeStruct((OD, OH, OW, NC_pad), dtype),
        grid_spec=pltpu.PrefetchScalarGridSpec(
            num_scalar_prefetch=0,
            grid=(n_lane_blocks, OD),
            in_specs=in_specs,
            out_specs=pl.BlockSpec((1, OH, OW, TC),
                                   lambda c, od: (od, 0, 0, c)),
        ),
        compiler_params=pltpu.CompilerParams(
            dimension_semantics=("parallel", "parallel"),
            vmem_limit_bytes=int(vmem_limit)),
    )(*([xk] * KD))                       # same array, one view per depth tap

    # back to PyTorch NCDHW (small output, fused under jit)
    out = out[..., :NC].reshape(OD, OH, OW, N, C).transpose(3, 4, 0, 1, 2)
    return out


# jit the whole wrapper so relayout (pad + fill + transpose + channel pad) and the
# output back-transpose each fuse into a single HBM pass around the kernel.
maxpool3d_same = jax.jit(_maxpool3d_same_impl, static_argnums=(1, 2, 3))


# ----------------------- NumPy reference (for self-check) ----------------------
def ref_maxpool3d(x_np, kernel_size, stride):
    N, C, D, H, W = x_np.shape
    KD, KH, KW = kernel_size
    SD, SH, SW = stride
    p = get_padding_shape(kernel_size, stride)
    xz = np.pad(x_np, ((0, 0), (0, 0),
                       (p[4], p[5]), (p[2], p[3]), (p[0], p[1])))
    Dp, Hp, Wp = xz.shape[2:]
    OD = _ceil_pool_out(Dp, KD, SD)
    OH = _ceil_pool_out(Hp, KH, SH)
    OW = _ceil_pool_out(Wp, KW, SW)
    out = np.empty((N, C, OD, OH, OW), dtype=x_np.dtype)
    for od in range(OD):
        for oh in range(OH):
            for ow in range(OW):
                d0, h0, w0 = od * SD, oh * SH, ow * SW
                win = xz[:, :, d0:min(d0 + KD, Dp),
                               h0:min(h0 + KH, Hp),
                               w0:min(w0 + KW, Wp)]
                out[:, :, od, oh, ow] = win.max(axis=(2, 3, 4))
    return out


if __name__ == "__main__":
    key = jax.random.PRNGKey(0)

    # (shape, kernel_size, stride, max_lane_tile)
    cases = [
        # I3D-style small case
        ((2, 4, 8, 16, 16), (3, 3, 3), (2, 2, 2), None),
        # exercises the ceil_mode overhang (-inf fill) in D, H and W
        ((2, 4, 7, 15, 15), (2, 2, 2), (2, 2, 2), None),
        # exercises lane tiling (NC = 256 split into two 128-lane blocks)
        ((1, 256, 4, 9, 9), (2, 3, 3), (1, 2, 2), 128),
    ]

    for shape, ks, st, tile in cases:
        key, sub = jax.random.split(key)
        x = jax.random.normal(sub, shape, dtype=jnp.float32)
        y = jax.block_until_ready(maxpool3d_same(x, ks, st, tile))
        y_ref = ref_maxpool3d(np.asarray(x), ks, st)
        assert y.shape == y_ref.shape, (shape, ks, st, y.shape, y_ref.shape)
        np.testing.assert_allclose(np.asarray(y), y_ref, rtol=0, atol=0)

    print("KERNEL_OK")
</pallas_src>

<mosaic_0001>
module attributes {stable_mosaic.version = 11 : i64} {
  func.func @_maxpool3d_kernel(%arg0: i32, %arg1: i32, %arg2: memref<1x2x2x9x9x128xf32, #tpu.memory_space<vmem>>, %arg3: memref<1x2x2x9x9x128xf32, #tpu.memory_space<vmem>>, %arg4: memref<1x2x2x9x9x128xf32, #tpu.memory_space<vmem>>, %arg5: memref<1x8x8x128xf32, #tpu.memory_space<vmem>>) attributes {dimension_semantics = [#tpu.dimension_semantics<parallel>, #tpu.dimension_semantics<parallel>], iteration_bounds = array<i64: 1, 4>, scalar_prefetch = 0 : i64, scratch_operands = 0 : i64, tpu.core_type = #tpu.core_type<tc>, window_params = [{transform_indices = @transform_0, window_bounds = array<i64: 1, 2, 2, 9, 9, 128>}, {transform_indices = @transform_1, window_bounds = array<i64: 1, 2, 2, 9, 9, 128>}, {transform_indices = @transform_2, window_bounds = array<i64: 1, 2, 2, 9, 9, 128>}, {transform_indices = @transform_3, window_bounds = array<i64: 1, 8, 8, 128>}]} {
    %c0 = arith.constant 0 : index
    %c0_0 = arith.constant 0 : index
    %c0_1 = arith.constant 0 : index
    %c0_2 = arith.constant 0 : index
    %c0_3 = arith.constant 0 : index
    %c0_4 = arith.constant 0 : index
    %0 = vector.load %arg2[%c0, %c0_0, %c0_1, %c0_2, %c0_3, %c0_4] : memref<1x2x2x9x9x128xf32, #tpu.memory_space<vmem>>, vector<1x1x1x8x8x128xf32>
    %1 = vector.shape_cast %0 : vector<1x1x1x8x8x128xf32> to vector<8x8x128xf32>
    %c0_5 = arith.constant 0 : index
    %c0_6 = arith.constant 0 : index
    %c1 = arith.constant 1 : index
    %c0_7 = arith.constant 0 : index
    %c0_8 = arith.constant 0 : index
    %c0_9 = arith.constant 0 : index
    %2 = vector.load %arg2[%c0_5, %c0_6, %c1, %c0_7, %c0_8, %c0_9] : memref<1x2x2x9x9x128xf32, #tpu.memory_space<vmem>>, vector<1x1x1x8x8x128xf32>
    %3 = vector.shape_cast %2 : vector<1x1x1x8x8x128xf32> to vector<8x8x128xf32>
    %4 = arith.maximumf %1, %3 : vector<8x8x128xf32>
    %c0_10 = arith.constant 0 : index
    %c0_11 = arith.constant 0 : index
    %c0_12 = arith.constant 0 : index
    %c0_13 = arith.constant 0 : index
    %c1_14 = arith.constant 1 : index
    %c0_15 = arith.constant 0 : index
    %5 = vector.load %arg2[%c0_10, %c0_11, %c0_12, %c0_13, %c1_14, %c0_15] : memref<1x2x2x9x9x128xf32, #tpu.memory_space<vmem>>, vector<1x1x1x8x8x128xf32>
    %6 = vector.shape_cast %5 : vector<1x1x1x8x8x128xf32> to vector<8x8x128xf32>
    %7 = arith.maximumf %4, %6 : vector<8x8x128xf32>
    %c0_16 = arith.constant 0 : index
    %c1_17 = arith.constant 1 : index
    %c0_18 = arith.constant 0 : index
    %c0_19 = arith.constant 0 : index
    %c0_20 = arith.constant 0 : index
    %c0_21 = arith.constant 0 : index
    %8 = vector.load %arg2[%c0_16, %c1_17, %c0_18, %c0_19, %c0_20, %c0_21] : memref<1x2x2x9x9x128xf32, #tpu.memory_space<vmem>>, vector<1x1x1x8x8x128xf32>
    %9 = vector.shape_cast %8 : vector<1x1x1x8x8x128xf32> to vector<8x8x128xf32>
    %10 = arith.maximumf %7, %9 : vector<8x8x128xf32>
    %c0_22 = arith.constant 0 : index
    %c1_23 = arith.constant 1 : index
    %c1_24 = arith.constant 1 : index
    %c0_25 = arith.constant 0 : index
    %c0_26 = arith.constant 0 : index
    %c0_27 = arith.constant 0 : index
    %11 = vector.load %arg2[%c0_22, %c1_23, %c1_24, %c0_25, %c0_26, %c0_27] : memref<1x2x2x9x9x128xf32, #tpu.memory_space<vmem>>, vector<1x1x1x8x8x128xf32>
    %12 = vector.shape_cast %11 : vector<1x1x1x8x8x128xf32> to vector<8x8x128xf32>
    %13 = arith.maximumf %10, %12 : vector<8x8x128xf32>
    %c0_28 = arith.constant 0 : index
    %c1_29 = arith.constant 1 : index
    %c0_30 = arith.constant 0 : index
    %c0_31 = arith.constant 0 : index
    %c1_32 = arith.constant 1 : index
    %c0_33 = arith.constant 0 : index
    %14 = vector.load %arg2[%c0_28, %c1_29, %c0_30, %c0_31, %c1_32, %c0_33] : memref<1x2x2x9x9x128xf32, #tpu.memory_space<vmem>>, vector<1x1x1x8x8x128xf32>
    %15 = vector.shape_cast %14 : vector<1x1x1x8x8x128xf32> to vector<8x8x128xf32>
    %16 = arith.maximumf %13, %15 : vector<8x8x128xf32>
    %c0_34 = arith.constant 0 : index
    %c0_35 = arith.constant 0 : index
    %c0_36 = arith.constant 0 : index
    %c1_37 = arith.constant 1 : index
    %c0_38 = arith.constant 0 : index
    %c0_39 = arith.constant 0 : index
    %17 = vector.load %arg2[%c0_34, %c0_35, %c0_36, %c1_37, %c0_38, %c0_39] : memref<1x2x2x9x9x128xf32, #tpu.memory_space<vmem>>, vector<1x1x1x8x8x128xf32>
    %18 = vector.shape_cast %17 : vector<1x1x1x8x8x128xf32> to vector<8x8x128xf32>
    %19 = arith.maximumf %16, %18 : vector<8x8x128xf32>
    %c0_40 = arith.constant 0 : index
    %c0_41 = arith.constant 0 : index
    %c1_42 = arith.constant 1 : index
    %c1_43 = arith.constant 1 : index
    %c0_44 = arith.constant 0 : index
    %c0_45 = arith.constant 0 : index
    %20 = vector.load %arg2[%c0_40, %c0_41, %c1_42, %c1_43, %c0_44, %c0_45] : memref<1x2x2x9x9x128xf32, #tpu.memory_space<vmem>>, vector<1x1x1x8x8x128xf32>
    %21 = vector.shape_cast %20 : vector<1x1x1x8x8x128xf32> to vector<8x8x128xf32>
    %22 = arith.maximumf %19, %21 : vector<8x8x128xf32>
    %c0_46 = arith.constant 0 : index
    %c0_47 = arith.constant 0 : index
    %c0_48 = arith.constant 0 : index
    %c1_49 = arith.constant 1 : index
    %c1_50 = arith.constant 1 : index
    %c0_51 = arith.constant 0 : index
    %23 = vector.load %arg2[%c0_46, %c0_47, %c0_48, %c1_49, %c1_50, %c0_51] : memref<1x2x2x9x9x128xf32, #tpu.memory_space<vmem>>, vector<1x1x1x8x8x128xf32>
    %24 = vector.shape_cast %23 : vector<1x1x1x8x8x128xf32> to vector<8x8x128xf32>
    %25 = arith.maximumf %22, %24 : vector<8x8x128xf32>
    %c0_52 = arith.constant 0 : index
    %c0_53 = arith.constant 0 : index
    %c0_54 = arith.constant 0 : index
    %c0_55 = arith.constant 0 : index
    %c0_56 = arith.constant 0 : index
    %c0_57 = arith.constant 0 : index
    %26 = vector.load %arg3[%c0_52, %c0_53, %c0_54, %c0_55, %c0_56, %c0_57] : memref<1x2x2x9x9x128xf32, #tpu.memory_space<vmem>>, vector<1x1x1x8x8x128xf32>
    %27 = vector.shape_cast %26 : vector<1x1x1x8x8x128xf32> to vector<8x8x128xf32>
    %28 = arith.maximumf %25, %27 : vector<8x8x128xf32>
    %c0_58 = arith.constant 0 : index
    %c0_59 = arith.constant 0 : index
    %c1_60 = arith.constant 1 : index
    %c0_61 = arith.constant 0 : index
    %c0_62 = arith.constant 0 : index
    %c0_63 = arith.constant 0 : index
    %29 = vector.load %arg3[%c0_58, %c0_59, %c1_60, %c0_61, %c0_62, %c0_63] : memref<1x2x2x9x9x128xf32, #tpu.memory_space<vmem>>, vector<1x1x1x8x8x128xf32>
    %30 = vector.shape_cast %29 : vector<1x1x1x8x8x128xf32> to vector<8x8x128xf32>
    %31 = arith.maximumf %28, %30 : vector<8x8x128xf32>
    %c0_64 = arith.constant 0 : index
    %c0_65 = arith.constant 0 : index
    %c0_66 = arith.constant 0 : index
    %c0_67 = arith.constant 0 : index
    %c1_68 = arith.constant 1 : index
    %c0_69 = arith.constant 0 : index
    %32 = vector.load %arg3[%c0_64, %c0_65, %c0_66, %c0_67, %c1_68, %c0_69] : memref<1x2x2x9x9x128xf32, #tpu.memory_space<vmem>>, vector<1x1x1x8x8x128xf32>
    %33 = vector.shape_cast %32 : vector<1x1x1x8x8x128xf32> to vector<8x8x128xf32>
    %34 = arith.maximumf %31, %33 : vector<8x8x128xf32>
    %c0_70 = arith.constant 0 : index
    %c1_71 = arith.constant 1 : index
    %c0_72 = arith.constant 0 : index
    %c0_73 = arith.constant 0 : index
    %c0_74 = arith.constant 0 : index
    %c0_75 = arith.constant 0 : index
    %35 = vector.load %arg3[%c0_70, %c1_71, %c0_72, %c0_73, %c0_74, %c0_75] : memref<1x2x2x9x9x128xf32, #tpu.memory_space<vmem>>, vector<1x1x1x8x8x128xf32>
    %36 = vector.shape_cast %35 : vector<1x1x1x8x8x128xf32> to vector<8x8x128xf32>
    %37 = arith.maximumf %34, %36 : vector<8x8x128xf32>
    %c0_76 = arith.constant 0 : index
    %c1_77 = arith.constant 1 : index
    %c1_78 = arith.constant 1 : index
    %c0_79 = arith.constant 0 : index
    %c0_80 = arith.constant 0 : index
    %c0_81 = arith.constant 0 : index
    %38 = vector.load %arg3[%c0_76, %c1_77, %c1_78, %c0_79, %c0_80, %c0_81] : memref<1x2x2x9x9x128xf32, #tpu.memory_space<vmem>>, vector<1x1x1x8x8x128xf32>
    %39 = vector.shape_cast %38 : vector<1x1x1x8x8x128xf32> to vector<8x8x128xf32>
    %40 = arith.maximumf %37, %39 : vector<8x8x128xf32>
    %c0_82 = arith.constant 0 : index
    %c1_83 = arith.constant 1 : index
    %c0_84 = arith.constant 0 : index
    %c0_85 = arith.constant 0 : index
    %c1_86 = arith.constant 1 : index
    %c0_87 = arith.constant 0 : index
    %41 = vector.load %arg3[%c0_82, %c1_83, %c0_84, %c0_85, %c1_86, %c0_87] : memref<1x2x2x9x9x128xf32, #tpu.memory_space<vmem>>, vector<1x1x1x8x8x128xf32>
    %42 = vector.shape_cast %41 : vector<1x1x1x8x8x128xf32> to vector<8x8x128xf32>
    %43 = arith.maximumf %40, %42 : vector<8x8x128xf32>
    %c0_88 = arith.constant 0 : index
    %c0_89 = arith.constant 0 : index
    %c0_90 = arith.constant 0 : index
    %c1_91 = arith.constant 1 : index
    %c0_92 = arith.constant 0 : index
    %c0_93 = arith.constant 0 : index
    %44 = vector.load %arg3[%c0_88, %c0_89, %c0_90, %c1_91, %c0_92, %c0_93] : memref<1x2x2x9x9x128xf32, #tpu.memory_space<vmem>>, vector<1x1x1x8x8x128xf32>
    %45 = vector.shape_cast %44 : vector<1x1x1x8x8x128xf32> to vector<8x8x128xf32>
    %46 = arith.maximumf %43, %45 : vector<8x8x128xf32>
    %c0_94 = arith.constant 0 : index
    %c0_95 = arith.constant 0 : index
    %c1_96 = arith.constant 1 : index
    %c1_97 = arith.constant 1 : index
    %c0_98 = arith.constant 0 : index
    %c0_99 = arith.constant 0 : index
    %47 = vector.load %arg3[%c0_94, %c0_95, %c1_96, %c1_97, %c0_98, %c0_99] : memref<1x2x2x9x9x128xf32, #tpu.memory_space<vmem>>, vector<1x1x1x8x8x128xf32>
    %48 = vector.shape_cast %47 : vector<1x1x1x8x8x128xf32> to vector<8x8x128xf32>
    %49 = arith.maximumf %46, %48 : vector<8x8x128xf32>
    %c0_100 = arith.constant 0 : index
    %c0_101 = arith.constant 0 : index
    %c0_102 = arith.constant 0 : index
    %c1_103 = arith.constant 1 : index
    %c1_104 = arith.constant 1 : index
    %c0_105 = arith.constant 0 : index
    %50 = vector.load %arg3[%c0_100, %c0_101, %c0_102, %c1_103, %c1_104, %c0_105] : memref<1x2x2x9x9x128xf32, #tpu.memory_space<vmem>>, vector<1x1x1x8x8x128xf32>
    %51 = vector.shape_cast %50 : vector<1x1x1x8x8x128xf32> to vector<8x8x128xf32>
    %52 = arith.maximumf %49, %51 : vector<8x8x128xf32>
    %c0_106 = arith.constant 0 : index
    %c0_107 = arith.constant 0 : index
    %c0_108 = arith.constant 0 : index
    %c0_109 = arith.constant 0 : index
    %c0_110 = arith.constant 0 : index
    %c0_111 = arith.constant 0 : index
    %53 = vector.load %arg4[%c0_106, %c0_107, %c0_108, %c0_109, %c0_110, %c0_111] : memref<1x2x2x9x9x128xf32, #tpu.memory_space<vmem>>, vector<1x1x1x8x8x128xf32>
    %54 = vector.shape_cast %53 : vector<1x1x1x8x8x128xf32> to vector<8x8x128xf32>
    %55 = arith.maximumf %52, %54 : vector<8x8x128xf32>
    %c0_112 = arith.constant 0 : index
    %c0_113 = arith.constant 0 : index
    %c1_114 = arith.constant 1 : index
    %c0_115 = arith.constant 0 : index
    %c0_116 = arith.constant 0 : index
    %c0_117 = arith.constant 0 : index
    %56 = vector.load %arg4[%c0_112, %c0_113, %c1_114, %c0_115, %c0_116, %c0_117] : memref<1x2x2x9x9x128xf32, #tpu.memory_space<vmem>>, vector<1x1x1x8x8x128xf32>
    %57 = vector.shape_cast %56 : vector<1x1x1x8x8x128xf32> to vector<8x8x128xf32>
    %58 = arith.maximumf %55, %57 : vector<8x8x128xf32>
    %c0_118 = arith.constant 0 : index
    %c0_119 = arith.constant 0 : index
    %c0_120 = arith.constant 0 : index
    %c0_121 = arith.constant 0 : index
    %c1_122 = arith.constant 1 : index
    %c0_123 = arith.constant 0 : index
    %59 = vector.load %arg4[%c0_118, %c0_119, %c0_120, %c0_121, %c1_122, %c0_123] : memref<1x2x2x9x9x128xf32, #tpu.memory_space<vmem>>, vector<1x1x1x8x8x128xf32>
    %60 = vector.shape_cast %59 : vector<1x1x1x8x8x128xf32> to vector<8x8x128xf32>
    %61 = arith.maximumf %58, %60 : vector<8x8x128xf32>
    %c0_124 = arith.constant 0 : index
    %c1_125 = arith.constant 1 : index
    %c0_126 = arith.constant 0 : index
    %c0_127 = arith.constant 0 : index
    %c0_128 = arith.constant 0 : index
    %c0_129 = arith.constant 0 : index
    %62 = vector.load %arg4[%c0_124, %c1_125, %c0_126, %c0_127, %c0_128, %c0_129] : memref<1x2x2x9x9x128xf32, #tpu.memory_space<vmem>>, vector<1x1x1x8x8x128xf32>
    %63 = vector.shape_cast %62 : vector<1x1x1x8x8x128xf32> to vector<8x8x128xf32>
    %64 = arith.maximumf %61, %63 : vector<8x8x128xf32>
    %c0_130 = arith.constant 0 : index
    %c1_131 = arith.constant 1 : index
    %c1_132 = arith.constant 1 : index
    %c0_133 = arith.constant 0 : index
    %c0_134 = arith.constant 0 : index
    %c0_135 = arith.constant 0 : index
    %65 = vector.load %arg4[%c0_130, %c1_131, %c1_132, %c0_133, %c0_134, %c0_135] : memref<1x2x2x9x9x128xf32, #tpu.memory_space<vmem>>, vector<1x1x1x8x8x128xf32>
    %66 = vector.shape_cast %65 : vector<1x1x1x8x8x128xf32> to vector<8x8x128xf32>
    %67 = arith.maximumf %64, %66 : vector<8x8x128xf32>
    %c0_136 = arith.constant 0 : index
    %c1_137 = arith.constant 1 : index
    %c0_138 = arith.constant 0 : index
    %c0_139 = arith.constant 0 : index
    %c1_140 = arith.constant 1 : index
    %c0_141 = arith.constant 0 : index
    %68 = vector.load %arg4[%c0_136, %c1_137, %c0_138, %c0_139, %c1_140, %c0_141] : memref<1x2x2x9x9x128xf32, #tpu.memory_space<vmem>>, vector<1x1x1x8x8x128xf32>
    %69 = vector.shape_cast %68 : vector<1x1x1x8x8x128xf32> to vector<8x8x128xf32>
    %70 = arith.maximumf %67, %69 : vector<8x8x128xf32>
    %c0_142 = arith.constant 0 : index
    %c0_143 = arith.constant 0 : index
    %c0_144 = arith.constant 0 : index
    %c1_145 = arith.constant 1 : index
    %c0_146 = arith.constant 0 : index
    %c0_147 = arith.constant 0 : index
    %71 = vector.load %arg4[%c0_142, %c0_143, %c0_144, %c1_145, %c0_146, %c0_147] : memref<1x2x2x9x9x128xf32, #tpu.memory_space<vmem>>, vector<1x1x1x8x8x128xf32>
    %72 = vector.shape_cast %71 : vector<1x1x1x8x8x128xf32> to vector<8x8x128xf32>
    %73 = arith.maximumf %70, %72 : vector<8x8x128xf32>
    %c0_148 = arith.constant 0 : index
    %c0_149 = arith.constant 0 : index
    %c1_150 = arith.constant 1 : index
    %c1_151 = arith.constant 1 : index
    %c0_152 = arith.constant 0 : index
    %c0_153 = arith.constant 0 : index
    %74 = vector.load %arg4[%c0_148, %c0_149, %c1_150, %c1_151, %c0_152, %c0_153] : memref<1x2x2x9x9x128xf32, #tpu.memory_space<vmem>>, vector<1x1x1x8x8x128xf32>
    %75 = vector.shape_cast %74 : vector<1x1x1x8x8x128xf32> to vector<8x8x128xf32>
    %76 = arith.maximumf %73, %75 : vector<8x8x128xf32>
    %c0_154 = arith.constant 0 : index
    %c0_155 = arith.constant 0 : index
    %c0_156 = arith.constant 0 : index
    %c1_157 = arith.constant 1 : index
    %c1_158 = arith.constant 1 : index
    %c0_159 = arith.constant 0 : index
    %77 = vector.load %arg4[%c0_154, %c0_155, %c0_156, %c1_157, %c1_158, %c0_159] : memref<1x2x2x9x9x128xf32, #tpu.memory_space<vmem>>, vector<1x1x1x8x8x128xf32>
    %78 = vector.shape_cast %77 : vector<1x1x1x8x8x128xf32> to vector<8x8x128xf32>
    %79 = arith.maximumf %76, %78 : vector<8x8x128xf32>
    %c0_160 = arith.constant 0 : index
    %c0_161 = arith.constant 0 : index
    %c0_162 = arith.constant 0 : index
    %c0_163 = arith.constant 0 : index
    %80 = vector.load %arg5[%c0_160, %c0_161, %c0_162, %c0_163] : memref<1x8x8x128xf32, #tpu.memory_space<vmem>>, vector<1x8x8x128xf32>
    %81 = vector.shape_cast %80 : vector<1x8x8x128xf32> to vector<8x8x128xf32>
    %82 = vector.shape_cast %79 : vector<8x8x128xf32> to vector<1x8x8x128xf32>
    tpu.vector_store %arg5[%c0_160, %c0_161, %c0_162, %c0_163], %82 {strides = array<i32>} : memref<1x8x8x128xf32, #tpu.memory_space<vmem>>, vector<1x8x8x128xf32>,
    return
  }
  func.func @transform_0(%arg0: i32, %arg1: i32) -> (i32, i32, i32, i32, i32, i32) {
    %c2_i32 = arith.constant 2 : i32
    %0 = arith.muli %arg1, %c2_i32 : i32
    %c0_i32 = arith.constant 0 : i32
    %1 = arith.addi %0, %c0_i32 : i32
    %c0_i32_0 = arith.constant 0 : i32
    %c0_i32_1 = arith.constant 0 : i32
    %c0_i32_2 = arith.constant 0 : i32
    %c0_i32_3 = arith.constant 0 : i32
    %c0_i32_4 = arith.constant 0 : i32
    return %1, %c0_i32_0, %c0_i32_1, %c0_i32_2, %c0_i32_3, %arg0 : i32, i32, i32, i32, i32, i32
  }
  func.func @transform_1(%arg0: i32, %arg1: i32) -> (i32, i32, i32, i32, i32, i32) {
    %c2_i32 = arith.constant 2 : i32
    %0 = arith.muli %arg1, %c2_i32 : i32
    %c1_i32 = arith.constant 1 : i32
    %1 = arith.addi %0, %c1_i32 : i32
    %c0_i32 = arith.constant 0 : i32
    %c0_i32_0 = arith.constant 0 : i32
    %c0_i32_1 = arith.constant 0 : i32
    %c0_i32_2 = arith.constant 0 : i32
    %c0_i32_3 = arith.constant 0 : i32
    return %1, %c0_i32, %c0_i32_0, %c0_i32_1, %c0_i32_2, %arg0 : i32, i32, i32, i32, i32, i32
  }
  func.func @transform_2(%arg0: i32, %arg1: i32) -> (i32, i32, i32, i32, i32, i32) {
    %c2_i32 = arith.constant 2 : i32
    %0 = arith.muli %arg1, %c2_i32 : i32
    %c2_i32_0 = arith.constant 2 : i32
    %1 = arith.addi %0, %c2_i32_0 : i32
    %c0_i32 = arith.constant 0 : i32
    %c0_i32_1 = arith.constant 0 : i32
    %c0_i32_2 = arith.constant 0 : i32
    %c0_i32_3 = arith.constant 0 : i32
    %c0_i32_4 = arith.constant 0 : i32
    return %1, %c0_i32, %c0_i32_1, %c0_i32_2, %c0_i32_3, %arg0 : i32, i32, i32, i32, i32, i32
  }
  func.func @transform_3(%arg0: i32, %arg1: i32) -> (i32, i32, i32, i32) {
    %c0_i32 = arith.constant 0 : i32
    %c0_i32_0 = arith.constant 0 : i32
    %c0_i32_1 = arith.constant 0 : i32
    return %arg1, %c0_i32, %c0_i32_0, %arg0 : i32, i32, i32, i32
  }
}

</mosaic_0001>

<bundles_post_ra>
// kernel: _maxpool3d_same_impl.1
= control target key start
LH: loop header
LB: loop body
LE: loop exit
PB: predicated region body
PF: predicated region fallthrough
CT: control target
= control target key end

     0   :  { %s1126_s12 = smov 0   ;;  %s1128_s13 = smov 0   ;;  %s1419_s0 = inlined_call_operand.vmem [shape: f32[9,2,2,9,9,128], index: 0, kind: input, shape index: {}, may-alias: {0,1,2}]   ;;  %s1420_s1 = inlined_call_operand.vmem [shape: f32[9,2,2,9,9,128], index: 1, kind: input, shape index: {}, may-alias: {0,1,2}]   ;;  %s1421_s2 = inlined_call_operand.vmem [shape: f32[9,2,2,9,9,128], index: 2, kind: input, shape index: {}, may-alias: {0,1,2}]   ;;  %s1422_s3 = inlined_call_operand.vmem [shape: f32[4,8,8,128], index: 3, kind: output, shape index: {}]  }
   0x1   :  { %s1130_s14 = smov 0  }
   0x2 LB: > { %s22_s15 = sadd.s32 1, %s1100_s13  ;;  %p875_p0 = scmp.ge.s32.totalorder %s1104_s14, 1  ;;  %s1104_s14 = sphi %s1130_s14, %s13_s14   ;;  %s1100_s13 = sphi %s1128_s13, %s1425_s13   ;;  %s1096_s12 = sphi %s1126_s12, %s1424_s12  }
   0x3   : > { %p23_p1 = scmp.ge.s32.totalorder %s22_s15, 4  ;;  %p206_p2 = scmp.lt.s32.totalorder %s1104_s14, 5 }
   0x5   : > { %s1427_s15 = smov (%p23_p1, %s22_s15), 0  ;;  %p207_p3 = pnand %p875_p0, %p206_p2 }
   0x6   : > { %s1147_s16 = sshll.u32 (!%p207_p3), %s1096_s12, 1  ;;  %p291_p7 = scmp.lt.s32.totalorder (!%p207_p3), %s1096_s12, 3 }
   0x7   : > { %210 = sbr.rel (%p207_p3) target bundleno = 113 (0x71), region = 32  ;;  %p258_p4 = scmp.lt.s32.totalorder (!%p207_p3), %s1147_s16, 8 }
   0x8   : > { %s268_s18 = sadd.s32 (!%p207_p3), 1, %s1147_s16  ;;  %s280_s27 = sadd.s32 (!%p207_p3), 2, %s1147_s16 }
   0x9   : > { %p269_p5 = scmp.lt.s32.totalorder (!%p207_p3), %s268_s18, 8  ;;  %p1182_p6 = scmp.lt.s32.totalorder (!%p207_p3), %s280_s27, 8 }
   0xc   : > { %s259_s17 = scalar_select %p258_p4, %s1147_s16, 8 }
   0xd   : > { %s1429_s18 = smov (!%p269_p5, %s268_s18), 8  ;;  %s1431_s27 = smov (!%p1182_p6, %s280_s27), 8 }
   0xe   : > { %s1055_s19 = smul.u32 576, %s259_s17  ;;  %s1433_s12 = smov (!%p291_p7, %s1096_s12), 3 }
   0xf   : > { %s1056_s23 = smul.u32 576, %s1429_s18  ;;  %s1054_s6 = sshll.u32 %s1433_s12, 6 }
  0x10   : > { %s1155_s22 = scalar_lea.vmem %s1419_s0, %s1055_s19  ;;  %s1057_s29 = smul.u32 576, %s1431_s27 }
  0x11   : > { %v299_v0 = vld [vmem:[%s1155_s22] sm:$0xff]  ;;  %v884_v1 = vld [vmem:[%s1155_s22 + $0x90] sm:$0xff]  ;;  %s1175_s26 = scalar_lea.vmem %s1420_s1, %s1056_s23  ;;  %s1343_s9 = scalar_lea.vmem %s1422_s3, %s1054_s6 }
  0x12   : > { %v324_v2 = vld [vmem:[%s1155_s22 + $0x1] sm:$0xff]  ;;  %v316_v3 = vmax.f32 %v299_v0, %v884_v1  ;;  %v916_v5 = vld [vmem:[%s1155_s22 + $0x10] sm:$0xff]  ;;  %s1224_s5 = scalar_lea.vmem %s1421_s2, %s1057_s29 }
  0x13   : > { %v892_v4 = vld [vmem:[%s1155_s22 + $0x120] sm:$0xff]  ;;  %v932_v7 = vld [vmem:[%s1155_s22 + $0x11] sm:$0xff] }
  0x14   : > { %v924_v6 = vld [vmem:[%s1155_s22 + $0xa0] sm:$0xff]  ;;  %v332_v8 = vmax.f32 %v316_v3, %v324_v2  ;;  %v900_v10 = vld [vmem:[%s1155_s22 + $0x1b0] sm:$0xff] }
  0x15   : > { %v317_v9 = vmax.f32 %v916_v5, %v924_v6  ;;  %v908_v13 = vld [vmem:[%s1155_s22 + $0x121] sm:$0xff]  ;;  %v893_v15 = vld [vmem:[%s1155_s22 + $0x130] sm:$0xff] }
  0x16   : > { %v349_v11 = vmax.f32 %v332_v8, %v892_v4  ;;  %v901_v16 = vld [vmem:[%s1155_s22 + $0x1c0] sm:$0xff]  ;;  %v909_v20 = vld [vmem:[%s1155_s22 + $0x131] sm:$0xff] }
  0x17   : > { %v333_v12 = vmax.f32 %v317_v9, %v932_v7  ;;  %v917_v19 = vld [vmem:[%s1155_s22 + $0x20] sm:$0xff]  ;;  %v925_v21 = vld [vmem:[%s1155_s22 + $0xb0] sm:$0xff] }
  0x18   : > { %v366_v14 = vmax.f32 %v349_v11, %v900_v10  ;;  %v933_v22 = vld [vmem:[%s1155_s22 + $0x21] sm:$0xff]  ;;  %v318_v25 = vmax.f32 %v917_v19, %v925_v21  ;;  %v902_v31 = vld [vmem:[%s1155_s22 + $0x1d0] sm:$0xff] }
  0x19   : > { %v350_v18 = vmax.f32 %v333_v12, %v893_v15  ;;  %v894_v29 = vld [vmem:[%s1155_s22 + $0x140] sm:$0xff]  ;;  %v918_v32 = vld [vmem:[%s1155_s22 + $0x30] sm:$0xff] }
  0x1a   : > { %v382_v17 = vmax.f32 %v366_v14, %v908_v13  ;;  %v334_v28 = vmax.f32 %v318_v25, %v933_v22  ;;  %v440_v30 = vld [vmem:[%s1175_s26] sm:$0xff]  ;;  %v934_v37 = vld [vmem:[%s1155_s22 + $0x31] sm:$0xff] }
  0x1b   : > { %v367_v24 = vmax.f32 %v350_v18, %v901_v16  ;;  %v926_v36 = vld [vmem:[%s1155_s22 + $0xc0] sm:$0xff]  ;;  %v940_v38 = vld [vmem:[%s1175_s26 + $0x90] sm:$0xff] }
  0x1c   : > { %v399_v23 = vmax.f32 %v382_v17, %v916_v5  ;;  %v351_v35 = vmax.f32 %v334_v28, %v894_v29  ;;  %v910_v39 = vld [vmem:[%s1155_s22 + $0x141] sm:$0xff]  ;;  %v319_v40 = vmax.f32 %v918_v32, %v926_v36  ;;  %v1192_v45 = vld [vmem:[%s1175_s26 + $0x10] sm:$0xff] }
  0x1d   : > { %v383_v27 = vmax.f32 %v367_v24, %v909_v20  ;;  %v473_v44 = vld [vmem:[%s1175_s26 + $0x1] sm:$0xff]  ;;  %v895_v47 = vld [vmem:[%s1155_s22 + $0x150] sm:$0xff] }
  0x1e   : > { %v416_v26 = vmax.f32 %v399_v23, %v924_v6  ;;  %v368_v43 = vmax.f32 %v351_v35, %v902_v31  ;;  %v335_v46 = vmax.f32 %v319_v40, %v934_v37  ;;  %v948_v49 = vld [vmem:[%s1175_s26 + $0x120] sm:$0xff]  ;;  %v927_v56 = vld [vmem:[%s1155_s22 + $0xd0] sm:$0xff] }
  0x1f   : > { %v400_v34 = vmax.f32 %v383_v27, %v917_v19  ;;  %v903_v52 = vld [vmem:[%s1155_s22 + $0x1e0] sm:$0xff]  ;;  %v911_v60 = vld [vmem:[%s1155_s22 + $0x151] sm:$0xff] }
  0x20   : > { %v432_v33 = vmax.f32 %v416_v26, %v932_v7  ;;  %v384_v51 = vmax.f32 %v368_v43, %v910_v39  ;;  %v980_v53 = vld [vmem:[%s1175_s26 + $0xa0] sm:$0xff]  ;;  %v352_v54 = vmax.f32 %v335_v46, %v895_v47  ;;  %v956_v63 = vld [vmem:[%s1175_s26 + $0x1b0] sm:$0xff] }
  0x21   : > { %v417_v42 = vmax.f32 %v400_v34, %v925_v21  ;;  %v919_v55 = vld [vmem:[%s1155_s22 + $0x40] sm:$0xff]  ;;  %v1209_v0 = vld [vmem:[%s1175_s26 + $0x11] sm:$0xff] }
  0x22   : > { %v448_v41 = vmax.f32 %v432_v33, %v440_v30  ;;  %v401_v59 = vmax.f32 %v384_v51, %v918_v32  ;;  %v935_v61 = vld [vmem:[%s1155_s22 + $0x41] sm:$0xff]  ;;  %v320_v62 = vmax.f32 %v919_v55, %v927_v56  ;;  %v369_v1 = vmax.f32 %v352_v54, %v903_v52  ;;  %v949_v7 = vld [vmem:[%s1175_s26 + $0x130] sm:$0xff] }
  0x23   : > { %v433_v50 = vmax.f32 %v417_v42, %v933_v22  ;;  %v964_v6 = vld [vmem:[%s1175_s26 + $0x121] sm:$0xff]  ;;  %v981_v15 = vld [vmem:[%s1175_s26 + $0xb0] sm:$0xff] }
  0x24   : > { %v465_v48 = vmax.f32 %v448_v41, %v940_v38  ;;  %v418_v4 = vmax.f32 %v401_v59, %v926_v36  ;;  %v336_v5 = vmax.f32 %v320_v62, %v935_v61  ;;  %v973_v8 = vld [vmem:[%s1175_s26 + $0x20] sm:$0xff]  ;;  %v385_v9 = vmax.f32 %v369_v1, %v911_v60  ;;  %v904_v18 = vld [vmem:[%s1155_s22 + $0x1f0] sm:$0xff] }
  0x25   : > { %v449_v58 = vmax.f32 %v433_v50, %v1192_v45  ;;  %v957_v12 = vld [vmem:[%s1175_s26 + $0x1c0] sm:$0xff]  ;;  %v920_v23 = vld [vmem:[%s1155_s22 + $0x50] sm:$0xff] }
  0x26   : > { %v481_v57 = vmax.f32 %v465_v48, %v473_v44  ;;  %v434_v13 = vmax.f32 %v418_v4, %v934_v37  ;;  %v896_v14 = vld [vmem:[%s1155_s22 + $0x160] sm:$0xff]  ;;  %v402_v16 = vmax.f32 %v385_v9, %v919_v55  ;;  %v936_v25 = vld [vmem:[%s1155_s22 + $0x51] sm:$0xff] }
  0x27   : > { %v466_v3 = vmax.f32 %v449_v58, %v980_v53  ;;  %v353_v17 = vmax.f32 %v336_v5, %v896_v14  ;;  %v912_v19 = vld [vmem:[%s1155_s22 + $0x161] sm:$0xff]  ;;  %v965_v26 = vld [vmem:[%s1175_s26 + $0x131] sm:$0xff] }
  0x28   : > { %v498_v2 = vmax.f32 %v481_v57, %v948_v49  ;;  %v450_v22 = vmax.f32 %v434_v13, %v973_v8  ;;  %v928_v24 = vld [vmem:[%s1155_s22 + $0xe0] sm:$0xff]  ;;  %v419_v28 = vmax.f32 %v402_v16, %v927_v56  ;;  %v1235_v34 = vld [vmem:[%s1175_s26 + $0x30] sm:$0xff] }
  0x29   : > { %v482_v11 = vmax.f32 %v466_v3, %v1209_v0  ;;  %v1231_v27 = vld [vmem:[%s1175_s26 + $0x21] sm:$0xff]  ;;  %v370_v29 = vmax.f32 %v353_v17, %v904_v18  ;;  %v321_v30 = vmax.f32 %v920_v23, %v928_v24  ;;  %v958_v43 = vld [vmem:[%s1175_s26 + $0x1d0] sm:$0xff] }
  0x2a   : > { %v515_v10 = vmax.f32 %v498_v2, %v956_v63  ;;  %v467_v33 = vmax.f32 %v450_v22, %v981_v15  ;;  %v589_v35 = vld [vmem:[%s1224_s5] sm:$0xff]  ;;  %v435_v37 = vmax.f32 %v419_v28, %v935_v61  ;;  %v1244_v46 = vld [vmem:[%s1175_s26 + $0x31] sm:$0xff] }
  0x2b   : > { %v499_v21 = vmax.f32 %v482_v11, %v949_v7  ;;  %v950_v36 = vld [vmem:[%s1175_s26 + $0x140] sm:$0xff]  ;;  %v386_v38 = vmax.f32 %v370_v29, %v912_v19  ;;  %v337_v39 = vmax.f32 %v321_v30, %v936_v25  ;;  %v913_v55 = vld [vmem:[%s1155_s22 + $0x171] sm:$0xff] }
  0x2c   : > { %v531_v20 = vmax.f32 %v515_v10, %v964_v6  ;;  %v483_v42 = vmax.f32 %v467_v33, %v1231_v27  ;;  %v982_v44 = vld [vmem:[%s1175_s26 + $0xc0] sm:$0xff]  ;;  %v451_v47 = vmax.f32 %v435_v37, %v1235_v34  ;;  %v929_v56 = vld [vmem:[%s1155_s22 + $0xf0] sm:$0xff] }
  0x2d   : > { %v516_v32 = vmax.f32 %v499_v21, %v957_v12  ;;  %v403_v48 = vmax.f32 %v386_v38, %v920_v23  ;;  %v905_v50 = vld [vmem:[%s1155_s22 + $0x200] sm:$0xff]  ;;  %v996_v58 = vld [vmem:[%s1224_s5 + $0x90] sm:$0xff] }
  0x2e   : > { %v548_v31 = vmax.f32 %v531_v20, %v1192_v45  ;;  %v897_v45 = vld [vmem:[%s1155_s22 + $0x170] sm:$0xff]  ;;  %v921_v51 = vld [vmem:[%s1155_s22 + $0x60] sm:$0xff]  ;;  %v500_v54 = vmax.f32 %v483_v42, %v950_v36  ;;  %v468_v60 = vmax.f32 %v451_v47, %v982_v44 }
  0x2f   : > { %v532_v41 = vmax.f32 %v516_v32, %v965_v26  ;;  %v354_v49 = vmax.f32 %v337_v39, %v897_v45  ;;  %v937_v57 = vld [vmem:[%s1155_s22 + $0x61] sm:$0xff]  ;;  %v420_v61 = vmax.f32 %v403_v48, %v928_v24  ;;  %v322_v63 = vmax.f32 %v921_v51, %v929_v56  ;;  %v951_v4 = vld [vmem:[%s1175_s26 + $0x150] sm:$0xff] }
  0x30   : > { %v565_v40 = vmax.f32 %v548_v31, %v980_v53  ;;  %v966_v59 = vld [vmem:[%s1175_s26 + $0x141] sm:$0xff]  ;;  %v517_v3 = vmax.f32 %v500_v54, %v958_v43  ;;  %v1262_v7 = vld [vmem:[%s1224_s5 + $0x10] sm:$0xff]  ;;  %v484_v9 = vmax.f32 %v468_v60, %v1244_v46 }
  0x31   : > { %v549_v53 = vmax.f32 %v532_v41, %v973_v8  ;;  %v371_v62 = vmax.f32 %v354_v49, %v905_v50  ;;  %v622_v2 = vld [vmem:[%s1224_s5 + $0x1] sm:$0xff]  ;;  %v436_v10 = vmax.f32 %v420_v61, %v936_v25  ;;  %v338_v12 = vmax.f32 %v322_v63, %v937_v57  ;;  %v983_v17 = vld [vmem:[%s1175_s26 + $0xd0] sm:$0xff] }
  0x32   : > { %v581_v52 = vmax.f32 %v565_v40, %v1209_v0  ;;  %v1258_v5 = vld [vmem:[%s1175_s26 + $0x40] sm:$0xff]  ;;  %v501_v19 = vmax.f32 %v484_v9, %v951_v4  ;;  %v967_v20 = vld [vmem:[%s1175_s26 + $0x151] sm:$0xff] }
  0x33   : > { %v566_v0 = vmax.f32 %v549_v53, %v981_v15  ;;  %v1004_v6 = vld [vmem:[%s1224_s5 + $0x120] sm:$0xff]  ;;  %v387_v11 = vmax.f32 %v371_v62, %v913_v55  ;;  %v533_v15 = vmax.f32 %v517_v3, %v966_v59  ;;  %v452_v21 = vmax.f32 %v436_v10, %v1258_v5  ;;  %v906_v24 = vld [vmem:[%s1155_s22 + $0x210] sm:$0xff] }
  0x34   : > { %v597_v1 = vmax.f32 %v581_v52, %v589_v35  ;;  %v1265_v8 = vld [vmem:[%s1224_s5 + $0xa0] sm:$0xff]  ;;  %v922_v25 = vld [vmem:[%s1155_s22 + $0x70] sm:$0xff] }
  0x35   : > { %v582_v14 = vmax.f32 %v566_v0, %v1231_v27  ;;  %v959_v16 = vld [vmem:[%s1175_s26 + $0x1e0] sm:$0xff]  ;;  %v404_v22 = vmax.f32 %v387_v11, %v921_v51  ;;  %v550_v28 = vmax.f32 %v533_v15, %v1235_v34  ;;  %v1012_v32 = vld [vmem:[%s1224_s5 + $0x1b0] sm:$0xff]  ;;  %v469_v36 = vmax.f32 %v452_v21, %v983_v17 }
  0x36   : > { %v614_v13 = vmax.f32 %v597_v1, %v996_v58  ;;  %v898_v18 = vld [vmem:[%s1155_s22 + $0x180] sm:$0xff]  ;;  %v1286_v33 = vld [vmem:[%s1224_s5 + $0x11] sm:$0xff]  ;;  %v518_v35 = vmax.f32 %v501_v19, %v959_v16 }
  0x37   : > { %v355_v23 = vmax.f32 %v338_v12, %v898_v18  ;;  %v598_v27 = vmax.f32 %v582_v14, %v1262_v7  ;;  %v1280_v29 = vld [vmem:[%s1175_s26 + $0x41] sm:$0xff]  ;;  %v421_v37 = vmax.f32 %v404_v22, %v929_v56  ;;  %v938_v39 = vld [vmem:[%s1155_s22 + $0x71] sm:$0xff]  ;;  %v567_v41 = vmax.f32 %v550_v28, %v982_v44 }
  0x38   : > { %v630_v26 = vmax.f32 %v614_v13, %v622_v2  ;;  %v914_v30 = vld [vmem:[%s1155_s22 + $0x181] sm:$0xff]  ;;  %v1292_v43 = vld [vmem:[%s1175_s26 + $0x50] sm:$0xff]  ;;  %v534_v50 = vmax.f32 %v518_v35, %v967_v20  ;;  %v485_v51 = vmax.f32 %v469_v36, %v1280_v29 }
  0x39   : > { %v930_v31 = vld [vmem:[%s1155_s22 + $0x100] sm:$0xff]  ;;  %v372_v38 = vmax.f32 %v355_v23, %v906_v24  ;;  %v615_v34 = vmax.f32 %v598_v27, %v1265_v8  ;;  %v1005_v48 = vld [vmem:[%s1224_s5 + $0x130] sm:$0xff]  ;;  %v437_v52 = vmax.f32 %v421_v37, %v937_v57  ;;  %v583_v55 = vmax.f32 %v567_v41, %v1244_v46 }
  0x3a   : > { %v647_v40 = vmax.f32 %v630_v26, %v1004_v6  ;;  %v952_v42 = vld [vmem:[%s1175_s26 + $0x160] sm:$0xff]  ;;  %v323_v45 = vmax.f32 %v922_v25, %v930_v31  ;;  %v960_v56 = vld [vmem:[%s1175_s26 + $0x1f0] sm:$0xff]  ;;  %v551_v62 = vmax.f32 %v534_v50, %v1258_v5 }
  0x3b   : > { %v1020_v47 = vld [vmem:[%s1224_s5 + $0x121] sm:$0xff]  ;;  %v388_v53 = vmax.f32 %v372_v38, %v914_v30  ;;  %v631_v54 = vmax.f32 %v615_v34, %v1286_v33  ;;  %v899_v60 = vld [vmem:[%s1155_s22 + $0x190] sm:$0xff]  ;;  %v502_v63 = vmax.f32 %v485_v51, %v952_v42  ;;  %v453_v1 = vmax.f32 %v437_v52, %v1292_v43 }
  0x3c   : > { %v1029_v49 = vld [vmem:[%s1224_s5 + $0x20] sm:$0xff]  ;;  %v664_v44 = vmax.f32 %v647_v40, %v1012_v32  ;;  %v339_v59 = vmax.f32 %v323_v45, %v938_v39  ;;  %v1310_v57 = vld [vmem:[%s1224_s5 + $0xb0] sm:$0xff]  ;;  %v568_v12 = vmax.f32 %v551_v62, %v983_v17 }
  0x3d   : > { %v984_v58 = vld [vmem:[%s1175_s26 + $0xe0] sm:$0xff]  ;;  %v405_v2 = vmax.f32 %v388_v53, %v922_v25  ;;  %v648_v3 = vmax.f32 %v631_v54, %v1005_v48  ;;  %v599_v4 = vmax.f32 %v583_v55, %v1029_v49  ;;  %v1317_v9 = vld [vmem:[%s1175_s26 + $0x51] sm:$0xff]  ;;  %v519_v13 = vmax.f32 %v502_v63, %v960_v56 }
  0x3e   : > { %v1013_v61 = vld [vmem:[%s1224_s5 + $0x1c0] sm:$0xff]  ;;  %v680_v46 = vmax.f32 %v664_v44, %v1020_v47  ;;  %v356_v10 = vmax.f32 %v339_v59, %v899_v60  ;;  %v1021_v11 = vld [vmem:[%s1224_s5 + $0x131] sm:$0xff]  ;;  %v470_v14 = vmax.f32 %v453_v1, %v984_v58  ;;  %v584_v25 = vmax.f32 %v568_v12, %v1280_v29 }
  0x3f   : > { %v907_v0 = vld [vmem:[%s1155_s22 + $0x220] sm:$0xff]  ;;  %v422_v15 = vmax.f32 %v405_v2, %v930_v31  ;;  %v915_v16 = vld [vmem:[%s1155_s22 + $0x191] sm:$0xff]  ;;  %v665_v19 = vmax.f32 %v648_v3, %v1013_v61  ;;  %v616_v20 = vmax.f32 %v599_v4, %v1310_v57 }
  0x40   : > { %v968_v6 = vld [vmem:[%s1175_s26 + $0x161] sm:$0xff]  ;;  %v697_v18 = vmax.f32 %v680_v46, %v1262_v7  ;;  %v1030_v21 = vld [vmem:[%s1224_s5 + $0x30] sm:$0xff]  ;;  %v373_v17 = vmax.f32 %v356_v10, %v907_v0  ;;  %v486_v27 = vmax.f32 %v470_v14, %v1317_v9 }
  0x41   : > { %v1045_v5 = vld [vmem:[%s1224_s5 + $0x21] sm:$0xff]  ;;  %v953_v22 = vld [vmem:[%s1175_s26 + $0x170] sm:$0xff]  ;;  %v535_v26 = vmax.f32 %v519_v13, %v968_v6  ;;  %v438_v7 = vmax.f32 %v422_v15, %v938_v39  ;;  %v681_v31 = vmax.f32 %v665_v19, %v1021_v11  ;;  %v600_v39 = vmax.f32 %v584_v25, %v1030_v21 }
  0x42   : > { %v1328_v23 = vld [vmem:[%s1175_s26 + $0x60] sm:$0xff]  ;;  %v714_v30 = vmax.f32 %v697_v18, %v1265_v8  ;;  %v632_v32 = vmax.f32 %v616_v20, %v1045_v5  ;;  %v985_v37 = vld [vmem:[%s1175_s26 + $0xf0] sm:$0xff]  ;;  %v389_v38 = vmax.f32 %v373_v17, %v915_v16  ;;  %v503_v40 = vmax.f32 %v486_v27, %v953_v22 }
  0x43   : > { %v1006_v24 = vld [vmem:[%s1224_s5 + $0x140] sm:$0xff]  ;;  %v1014_v29 = vld [vmem:[%s1224_s5 + $0x1d0] sm:$0xff]  ;;  %v552_v8 = vmax.f32 %v535_v26, %v1292_v43  ;;  %v454_v34 = vmax.f32 %v438_v7, %v1328_v23  ;;  %v698_v45 = vmax.f32 %v681_v31, %v1029_v49 }
  0x44   : > { %v923_v28 = vld [vmem:[%s1155_s22 + $0x80] sm:$0xff]  ;;  %v931_v41 = vld [vmem:[%s1155_s22 + $0x110] sm:$0xff]  ;;  %v730_v42 = vmax.f32 %v714_v30, %v1286_v33  ;;  %v649_v47 = vmax.f32 %v632_v32, %v1006_v24 }
  0x45   : > { %v1336_v35 = vld [vmem:[%s1224_s5 + $0xc0] sm:$0xff]  ;;  %v1046_v48 = vld [vmem:[%s1224_s5 + $0x31] sm:$0xff]  ;;  %v406_v52 = vmax.f32 %v389_v38, %v923_v28  ;;  %v569_v44 = vmax.f32 %v552_v8, %v984_v58  ;;  %v471_v55 = vmax.f32 %v454_v34, %v985_v37  ;;  %v715_v33 = vmax.f32 %v698_v45, %v1310_v57 }
  0x46   : > { %v961_v36 = vld [vmem:[%s1175_s26 + $0x200] sm:$0xff]  ;;  %v969_v50 = vld [vmem:[%s1175_s26 + $0x171] sm:$0xff]  ;;  %v617_v43 = vmax.f32 %v600_v39, %v1336_v35  ;;  %738 = vst [vmem:[%s1343_s9] sm:$0xff] %v730_v42  ;;  %v666_v49 = vmax.f32 %v649_v47, %v1014_v29 }
  0x47   : > { %v993_v51 = vld [vmem:[%s1175_s26 + $0x61] sm:$0xff]  ;;  %v520_v54 = vmax.f32 %v503_v40, %v961_v36  ;;  %v1007_v59 = vld [vmem:[%s1224_s5 + $0x150] sm:$0xff]  ;;  %v423_v62 = vmax.f32 %v406_v52, %v931_v41  ;;  %v585_v1 = vmax.f32 %v569_v44, %v1317_v9  ;;  %v731_v46 = vmax.f32 %v715_v33, %v1045_v5 }
  0x48   : > { %v1022_v53 = vld [vmem:[%s1224_s5 + $0x141] sm:$0xff]  ;;  %v633_v63 = vmax.f32 %v617_v43, %v1046_v48  ;;  %v487_v2 = vmax.f32 %v471_v55, %v993_v51  ;;  %v978_v0 = vld [vmem:[%s1175_s26 + $0x70] sm:$0xff] }
  0x49   : > { %v939_v56 = vld [vmem:[%s1155_s22 + $0x81] sm:$0xff]  ;;  %v536_v58 = vmax.f32 %v520_v54, %v969_v50  ;;  %v682_v3 = vmax.f32 %v666_v49, %v1022_v53  ;;  %v1039_v57 = vld [vmem:[%s1224_s5 + $0xd0] sm:$0xff]  ;;  %739 = vst [vmem:[%s1343_s9 + $0x8] sm:$0xff] %v731_v46 }
  0x4a   : > { %v1031_v60 = vld [vmem:[%s1224_s5 + $0x40] sm:$0xff]  ;;  %v962_v6 = vld [vmem:[%s1175_s26 + $0x210] sm:$0xff]  ;;  %v439_v10 = vmax.f32 %v423_v62, %v939_v56  ;;  %v650_v11 = vmax.f32 %v633_v63, %v1007_v59 }
  0x4b   : > { %v954_v61 = vld [vmem:[%s1175_s26 + $0x180] sm:$0xff]  ;;  %v601_v12 = vmax.f32 %v585_v1, %v1031_v60  ;;  %v553_v13 = vmax.f32 %v536_v58, %v1328_v23  ;;  %v699_v15 = vmax.f32 %v682_v3, %v1030_v21  ;;  %v1023_v16 = vld [vmem:[%s1224_s5 + $0x151] sm:$0xff] }
  0x4c   : > { %v1015_v4 = vld [vmem:[%s1224_s5 + $0x1e0] sm:$0xff]  ;;  %v504_v9 = vmax.f32 %v487_v2, %v954_v61  ;;  %v455_v19 = vmax.f32 %v439_v10, %v978_v0  ;;  %v994_v25 = vld [vmem:[%s1175_s26 + $0x71] sm:$0xff] }
  0x4d   : > { %v986_v14 = vld [vmem:[%s1175_s26 + $0x100] sm:$0xff]  ;;  %v667_v20 = vmax.f32 %v650_v11, %v1015_v4  ;;  %v618_v22 = vmax.f32 %v601_v12, %v1039_v57  ;;  %v570_v17 = vmax.f32 %v553_v13, %v985_v37  ;;  %v716_v26 = vmax.f32 %v699_v15, %v1336_v35  ;;  %v1032_v27 = vld [vmem:[%s1224_s5 + $0x50] sm:$0xff] }
  0x4e   : > { %v1047_v18 = vld [vmem:[%s1224_s5 + $0x41] sm:$0xff]  ;;  %v521_v24 = vmax.f32 %v504_v9, %v962_v6  ;;  %v472_v7 = vmax.f32 %v455_v19, %v986_v14  ;;  %v955_v32 = vld [vmem:[%s1175_s26 + $0x190] sm:$0xff] }
  0x4f   : > { %v970_v5 = vld [vmem:[%s1175_s26 + $0x181] sm:$0xff]  ;;  %v683_v21 = vmax.f32 %v667_v20, %v1023_v16  ;;  %v634_v28 = vmax.f32 %v618_v22, %v1047_v18  ;;  %v586_v30 = vmax.f32 %v570_v17, %v993_v51  ;;  %v732_v36 = vmax.f32 %v716_v26, %v1046_v48  ;;  %v1016_v38 = vld [vmem:[%s1224_s5 + $0x1f0] sm:$0xff] }
  0x50   : > { %v1008_v23 = vld [vmem:[%s1224_s5 + $0x160] sm:$0xff]  ;;  %v537_v31 = vmax.f32 %v521_v24, %v970_v5  ;;  %v488_v29 = vmax.f32 %v472_v7, %v994_v25  ;;  %v1048_v42 = vld [vmem:[%s1224_s5 + $0x51] sm:$0xff] }
  0x51   : > { %v1040_v37 = vld [vmem:[%s1224_s5 + $0xe0] sm:$0xff]  ;;  %v700_v35 = vmax.f32 %v683_v21, %v1031_v60  ;;  %v651_v39 = vmax.f32 %v634_v28, %v1008_v23  ;;  %v602_v8 = vmax.f32 %v586_v30, %v1032_v27  ;;  %740 = vst [vmem:[%s1343_s9 + $0x10] sm:$0xff] %v732_v36  ;;  %v971_v52 = vld [vmem:[%s1175_s26 + $0x191] sm:$0xff] }
  0x52   : > { %v554_v40 = vmax.f32 %v537_v31, %v978_v0  ;;  %v963_v34 = vld [vmem:[%s1175_s26 + $0x220] sm:$0xff]  ;;  %v505_v45 = vmax.f32 %v488_v29, %v955_v32  ;;  %v1009_v53 = vld [vmem:[%s1224_s5 + $0x170] sm:$0xff] }
  0x53   : > { %v1024_v41 = vld [vmem:[%s1224_s5 + $0x161] sm:$0xff]  ;;  %v717_v47 = vmax.f32 %v700_v35, %v1039_v57  ;;  %v668_v48 = vmax.f32 %v651_v39, %v1016_v38  ;;  %v619_v50 = vmax.f32 %v602_v8, %v1040_v37  ;;  %v1041_v60 = vld [vmem:[%s1224_s5 + $0xf0] sm:$0xff] }
  0x54   : > { %v571_v51 = vmax.f32 %v554_v40, %v986_v14  ;;  %v1033_v43 = vld [vmem:[%s1224_s5 + $0x60] sm:$0xff]  ;;  %v522_v44 = vmax.f32 %v505_v45, %v963_v34  ;;  %v987_v58 = vld [vmem:[%s1175_s26 + $0x110] sm:$0xff] }
  0x55   : > { %v733_v54 = vmax.f32 %v717_v47, %v1047_v18  ;;  %v684_v55 = vmax.f32 %v668_v48, %v1024_v41  ;;  %v635_v56 = vmax.f32 %v619_v50, %v1048_v42  ;;  %v979_v49 = vld [vmem:[%s1175_s26 + $0x80] sm:$0xff]  ;;  %v1025_v2 = vld [vmem:[%s1224_s5 + $0x171] sm:$0xff] }
  0x56   : > { %v587_v33 = vmax.f32 %v571_v51, %v994_v25  ;;  %v1017_v59 = vld [vmem:[%s1224_s5 + $0x200] sm:$0xff]  ;;  %v538_v61 = vmax.f32 %v522_v44, %v971_v52  ;;  %v1034_v14 = vld [vmem:[%s1224_s5 + $0x70] sm:$0xff] }
  0x57   : > { %741 = vst [vmem:[%s1343_s9 + $0x18] sm:$0xff] %v733_v54  ;;  %v701_v62 = vmax.f32 %v684_v55, %v1032_v27  ;;  %v652_v63 = vmax.f32 %v635_v56, %v1009_v53  ;;  %v1049_v0 = vld [vmem:[%s1224_s5 + $0x61] sm:$0xff]  ;;  %v1018_v15 = vld [vmem:[%s1224_s5 + $0x210] sm:$0xff] }
  0x58   : > { %v603_v1 = vmax.f32 %v587_v33, %v1033_v43  ;;  %v555_v46 = vmax.f32 %v538_v61, %v979_v49  ;;  %v995_v6 = vld [vmem:[%s1175_s26 + $0x81] sm:$0xff]  ;;  %v1050_v25 = vld [vmem:[%s1224_s5 + $0x71] sm:$0xff] }
  0x59   : > { %v718_v3 = vmax.f32 %v701_v62, %v1040_v37  ;;  %v669_v4 = vmax.f32 %v652_v63, %v1017_v59  ;;  %v1010_v10 = vld [vmem:[%s1224_s5 + $0x180] sm:$0xff]  ;;  %v1011_v7 = vld [vmem:[%s1224_s5 + $0x190] sm:$0xff] }
  0x5a   : > { %v620_v57 = vmax.f32 %v603_v1, %v1041_v60  ;;  %v572_v11 = vmax.f32 %v555_v46, %v987_v58  ;;  %v1042_v19 = vld [vmem:[%s1224_s5 + $0x100] sm:$0xff]  ;;  %v1027_v36 = vld [vmem:[%s1224_s5 + $0x191] sm:$0xff] }
  0x5b   : > { %v734_v12 = vmax.f32 %v718_v3, %v1048_v42  ;;  %v685_v13 = vmax.f32 %v669_v4, %v1025_v2  ;;  %v1026_v20 = vld [vmem:[%s1224_s5 + $0x181] sm:$0xff]  ;;  %v1043_v39 = vld [vmem:[%s1224_s5 + $0x110] sm:$0xff] }
  0x5c   : > { %v636_v9 = vmax.f32 %v620_v57, %v1049_v0  ;;  %v588_v16 = vmax.f32 %v572_v11, %v995_v6  ;;  %v1019_v30 = vld [vmem:[%s1224_s5 + $0x220] sm:$0xff] }
  0x5d   : > { %742 = vst [vmem:[%s1343_s9 + $0x20] sm:$0xff] %v734_v12  ;;  %v702_v18 = vmax.f32 %v685_v13, %v1033_v43  ;;  %v1035_v29 = vld [vmem:[%s1224_s5 + $0x80] sm:$0xff] }
  0x5e   : > { %v653_v5 = vmax.f32 %v636_v9, %v1010_v10  ;;  %v604_v22 = vmax.f32 %v588_v16, %v1034_v14  ;;  %v1051_v40 = vld [vmem:[%s1224_s5 + $0x81] sm:$0xff] }
  0x5f   : > { %v719_v17 = vmax.f32 %v702_v18, %v1041_v60 }
  0x60   : > { %v670_v24 = vmax.f32 %v653_v5, %v1018_v15  ;;  %v621_v26 = vmax.f32 %v604_v22, %v1042_v19 }
  0x61   : > { %v735_v23 = vmax.f32 %v719_v17, %v1049_v0 }
  0x62   : > { %v686_v27 = vmax.f32 %v670_v24, %v1026_v20  ;;  %v637_v21 = vmax.f32 %v621_v26, %v1050_v25 }
  0x63   : > { %743 = vst [vmem:[%s1343_s9 + $0x28] sm:$0xff] %v735_v23 }
  0x64   : > { %v703_v28 = vmax.f32 %v686_v27, %v1034_v14  ;;  %v654_v31 = vmax.f32 %v637_v21, %v1011_v7 }
  0x66   : > { %v720_v32 = vmax.f32 %v703_v28, %v1042_v19  ;;  %v671_v38 = vmax.f32 %v654_v31, %v1019_v30 }
  0x68   : > { %v736_v37 = vmax.f32 %v720_v32, %v1050_v25  ;;  %v687_v35 = vmax.f32 %v671_v38, %v1027_v36 }
  0x6a   : > { %744 = vst [vmem:[%s1343_s9 + $0x30] sm:$0xff] %v736_v37  ;;  %v704_v8 = vmax.f32 %v687_v35, %v1035_v29 }
  0x6c   : > { %v721_v34 = vmax.f32 %v704_v8, %v1043_v39 }
  0x6e   : > { %v737_v41 = vmax.f32 %v721_v34, %v1051_v40 }
  0x70   : > { %745 = vst [vmem:[%s1343_s9 + $0x38] sm:$0xff] %v737_v41 }
  0x71 PF: > { %s13_s14 = sadd.s32 1, %s1104_s14   ;;  %s1424_s12 = smov %s1100_s13 }
  0x72   : > { %p10_p8 = scmp.ge.s32.totalorder %s13_s14, 6   ;;  %s1425_s13 = smov %s1427_s15 }
  0x74   :  { %12 = sbr.rel (!%p10_p8) target bundleno = 2 (0x2), region = 83 }

</bundles_post_ra>
